<compile_context>
chip_gen: v5e
topology: v5e:2x2
jax: 0.10.0
libtpu: 0.0.40
codegen_flags: <defaults>
</compile_context>

<pallas_src>
import jax
import jax.numpy as jnp
from jax import lax
from jax.experimental import pallas as pl
from jax.experimental.pallas import tpu as pltpu


def fused_attention_kernel(rep_ref, logits_ref, w1_ref, b1_ref, w2_ref,
                           scal_ref, out_ref):
    """Both AttentionClassifier branches (ent & cont) for ONE instance.

    Grid axis 0 iterates instances ("parallel" -> megacore sharding on v7x).

    rep_ref:    (N, D)   CLS reps of this instance's atoms
    logits_ref: (N, 2)   per-atom logits, col 0 = ent, col 1 = cont
    w1_ref:     (D, 2D)  [w1_ent.T | w1_cont.T]   (VMEM-resident, DMA'd once)
    b1_ref:     (1, 2D)  [b1_ent   | b1_cont]
    w2_ref:     (1, 2D)  [w2_ent   | w2_cont]     (rows of the (1,D) linear2 w)
    scal_ref:   (3, 2)   SMEM: row0=[b2_e,b2_c], row1=[w3_e,w3_c], row2=[b3_e,b3_c]
    out_ref:    (N, 6)   [:,0:2]=att_weights, [:,2:4]=att_unnorm,
                         [:,4:6]=instance_output broadcast over rows
    """
    n, d = rep_ref.shape

    rep = rep_ref[...]                                               # (N, D)

    # linear1 for BOTH branches in one MXU pass -> tanh.
    h = jnp.tanh(
        jnp.dot(rep, w1_ref[...], preferred_element_type=jnp.float32)
        + b1_ref[...])                                               # (N, 2D)

    # linear2: VPU broadcast-mul + lane-masked reduce.  The ent/cont split at
    # lane d is not 128-aligned at D=32, so mask instead of slicing (in-vreg).
    prod = h * w2_ref[...]                                           # (N, 2D)
    lane = lax.broadcasted_iota(jnp.int32, prod.shape, 1)
    zero = jnp.zeros_like(prod)
    s_ent = jnp.sum(jnp.where(lane < d, prod, zero),
                    axis=-1, keepdims=True)                          # (N, 1)
    s_cont = jnp.sum(jnp.where(lane >= d, prod, zero),
                     axis=-1, keepdims=True)                         # (N, 1)

    # Per-column sigmoid with SMEM scalar bias (no lane concatenate).
    val_e = jax.nn.sigmoid(s_ent + scal_ref[0, 0])                   # (N, 1)
    val_c = jax.nn.sigmoid(s_cont + scal_ref[0, 1])                  # (N, 1)

    # Normalized attention weights (exact reciprocal: 1e-5 tolerance check).
    attw_e = val_e * pl.reciprocal(
        jnp.sum(val_e, axis=0, keepdims=True), approx=False)         # (N, 1)
    attw_c = val_c * pl.reciprocal(
        jnp.sum(val_c, axis=0, keepdims=True), approx=False)         # (N, 1)

    # einsum('jk, jm -> k') per branch, then linear3 -> sigmoid.
    logits = logits_ref[...]                                         # (N, 2)
    upd_e = jnp.sum(logits[:, 0:1] * attw_e, axis=0, keepdims=True)  # (1, 1)
    upd_c = jnp.sum(logits[:, 1:2] * attw_c, axis=0, keepdims=True)  # (1, 1)
    inst_e = jax.nn.sigmoid(upd_e * scal_ref[1, 0] + scal_ref[2, 0]) # (1, 1)
    inst_c = jax.nn.sigmoid(upd_c * scal_ref[1, 1] + scal_ref[2, 1]) # (1, 1)

    # Direct sub-slice stores into the packed output block (no shuffles).
    out_ref[:, 0:1] = attw_e
    out_ref[:, 1:2] = attw_c
    out_ref[:, 2:3] = val_e
    out_ref[:, 3:4] = val_c
    out_ref[:, 4:5] = jnp.broadcast_to(inst_e, (n, 1))
    out_ref[:, 5:6] = jnp.broadcast_to(inst_c, (n, 1))


@jax.jit
def fused_attention_classifiers(rep, logits, packed_params):
    """One pallas_call runs both branches for ALL instances (grid over B)."""
    b_inst, n_atoms, dim = rep.shape
    w1, b1, w2, scal = packed_params
    two_d = w1.shape[1]

    grid_spec = pltpu.PrefetchScalarGridSpec(
        num_scalar_prefetch=0,
        grid=(b_inst,),
        in_specs=[
            # Per-instance activations: one (N, D)/(N, 2) tile per grid step.
            pl.BlockSpec((None, n_atoms, dim), lambda b: (b, 0, 0)),
            pl.BlockSpec((None, n_atoms, 2), lambda b: (b, 0, 0)),
            # Packed weights: same block index every step -> fetched once,
            # resident in VMEM across all instances.
            pl.BlockSpec((dim, two_d), lambda b: (0, 0)),
            pl.BlockSpec((1, two_d), lambda b: (0, 0)),
            pl.BlockSpec((1, two_d), lambda b: (0, 0)),
            # Six scalars live on the scalar path.
            pl.BlockSpec(memory_space=pltpu.MemorySpace.SMEM),
        ],
        out_specs=pl.BlockSpec((None, n_atoms, 6), lambda b: (b, 0, 0)),
    )

    return pl.pallas_call(
        fused_attention_kernel,
        out_shape=jax.ShapeDtypeStruct((b_inst, n_atoms, 6), jnp.float32),
        grid_spec=grid_spec,
        compiler_params=pltpu.CompilerParams(
            dimension_semantics=("parallel",)),
    )(rep, logits, w1, b1, w2, scal)


def logic_model_forward_batch(all_atoms_cls, all_atoms_logits, labels,
                              packed_params):
    """LogicModel.forward / ent_and_cont_detection for a batch of instances.

    The HF encoder is external (see TODO); its CLS reps and logits are the
    inputs.  All instances run in ONE kernel launch; per-instance dicts are
    unpacked afterwards to preserve the original module's output structure.
    """
    packed = fused_attention_classifiers(all_atoms_cls, all_atoms_logits,
                                         packed_params)
    b_inst, n_atoms, _ = all_atoms_cls.shape
    # Eval-mode dropout mask is constant -> synthesized here, not in-kernel.
    ones = jnp.ones((n_atoms, 1), jnp.float32)

    outputs = []
    for i in range(b_inst):
        label0 = labels[i]
        if label0 == 0:
            ent_label, cont_label = 1, 0
        elif label0 == 1:
            ent_label, cont_label = 0, 0
        else:
            ent_label, cont_label = 0, 1

        ent = {
            'instance_output': packed[i, 0:1, 4],   # shape (1,), matches torch
            'att_weights': packed[i, :, 0:1],
            'att_unnorm': packed[i, :, 2:3],
            'dropout': ones,
            'label': jnp.array([ent_label], dtype=jnp.int32),
        }
        cont = {
            'instance_output': packed[i, 0:1, 5],
            'att_weights': packed[i, :, 1:2],
            'att_unnorm': packed[i, :, 3:4],
            'dropout': ones,
            'label': jnp.array([cont_label], dtype=jnp.int32),
        }
        outputs.append({'true_label': label0, 'ent': ent, 'cont': cont})
    return outputs


def init_linear(key, in_dim, out_dim):
    """Deterministic init mimicking torch.nn.Linear (uniform +/- 1/sqrt(in))."""
    k_w, k_b = jax.random.split(key)
    bound = 1.0 / float(in_dim) ** 0.5
    w = jax.random.uniform(k_w, (out_dim, in_dim), jnp.float32, -bound, bound)
    b = jax.random.uniform(k_b, (out_dim,), jnp.float32, -bound, bound)
    return w, b


def init_attention_classifier(key, dim):
    """Per-branch params in native torch.nn.Linear layouts."""
    k1, k2, k3 = jax.random.split(key, 3)
    w1, b1 = init_linear(k1, dim, dim)   # linear1: D -> D
    w2, b2 = init_linear(k2, dim, 1)     # linear2: D -> 1
    w3, b3 = init_linear(k3, 1, 1)       # linear3: 1 -> 1
    return (w1, b1, w2, b2, w3, b3)


def pack_params(ent_params, cont_params, dim):
    """Fuse both branches' params into 4 kernel-friendly packed arrays."""
    (w1e, b1e, w2e, b2e, w3e, b3e) = ent_params
    (w1c, b1c, w2c, b2c, w3c, b3c) = cont_params
    w1 = jnp.concatenate([w1e.T, w1c.T], axis=1)                  # (D, 2D)
    b1 = jnp.concatenate([b1e, b1c]).reshape(1, 2 * dim)          # (1, 2D)
    w2 = jnp.concatenate([w2e.reshape(1, dim),
                          w2c.reshape(1, dim)], axis=1)           # (1, 2D)
    scal = jnp.array([[b2e[0],    b2c[0]],
                      [w3e[0, 0], w3c[0, 0]],
                      [b3e[0],    b3c[0]]], jnp.float32)          # (3, 2)
    return (w1, b1, w2, scal)


def _reference_attention_classifier(rep, logit, params):
    """Pure-JAX reference (one branch, one instance) for correctness checks."""
    w1, b1, w2, b2, w3, b3 = params
    h = jnp.tanh(rep @ w1.T + b1)
    val = jax.nn.sigmoid(h @ w2.T + b2)
    att_w = val / jnp.sum(val)
    upd = jnp.sum(logit * att_w)
    out = jax.nn.sigmoid(upd * w3[0, 0] + b3[0])
    return out.reshape(1), att_w, val


if __name__ == "__main__":
    B_INST = 4      # number of NLI instances (batched into one launch)
    N_ATOMS = 8     # number of atoms per instance
    DIM = 32        # CLS dimensionality

    key = jax.random.PRNGKey(0)
    k_cls, k_logits, k_ent, k_cont = jax.random.split(key, 4)

    # Synthetic encoder outputs (stand-in for the pretrained transformer).
    all_atoms_cls = jax.random.normal(k_cls, (B_INST, N_ATOMS, DIM),
                                      jnp.float32)
    all_atoms_logits = jax.random.normal(k_logits, (B_INST, N_ATOMS, 2),
                                         jnp.float32)
    labels = [0, 1, 2, 0]   # batch['label'][0] for each instance

    ent_params = init_attention_classifier(k_ent, DIM)
    cont_params = init_attention_classifier(k_cont, DIM)
    packed_params = pack_params(ent_params, cont_params, DIM)

    outputs = logic_model_forward_batch(all_atoms_cls, all_atoms_logits,
                                        labels, packed_params)
    outputs = jax.block_until_ready(outputs)

    # Numerical check of every instance & branch against a pure-JAX reference.
    expected_labels = {0: (1, 0), 1: (0, 0), 2: (0, 1)}
    for i, out in enumerate(outputs):
        for branch, col, params in (('ent', 0, ent_params),
                                    ('cont', 1, cont_params)):
            ref_out, ref_attw, ref_attu = _reference_attention_classifier(
                all_atoms_cls[i], all_atoms_logits[i, :, col:col + 1], params)
            assert jnp.allclose(out[branch]['instance_output'], ref_out,
                                atol=1e-5, rtol=1e-5)
            assert jnp.allclose(out[branch]['att_weights'], ref_attw,
                                atol=1e-5, rtol=1e-5)
            assert jnp.allclose(out[branch]['att_unnorm'], ref_attu,
                                atol=1e-5, rtol=1e-5)
            assert jnp.all(out[branch]['dropout'] == 1.0)
        e_lbl, c_lbl = expected_labels[labels[i]]
        assert out['ent']['label'][0] == e_lbl
        assert out['cont']['label'][0] == c_lbl

    print("KERNEL_OK")
</pallas_src>

<mosaic_0001>
module attributes {stable_mosaic.version = 11 : i64} {
  func.func @fused_attention_kernel(%arg0: i32, %arg1: memref<1x8x32xf32, #tpu.memory_space<vmem>>, %arg2: memref<1x8x2xf32, #tpu.memory_space<vmem>>, %arg3: memref<32x64xf32, #tpu.memory_space<vmem>>, %arg4: memref<1x64xf32, #tpu.memory_space<vmem>>, %arg5: memref<1x64xf32, #tpu.memory_space<vmem>>, %arg6: memref<3x2xf32, #tpu.memory_space<smem>>, %arg7: memref<1x8x6xf32, #tpu.memory_space<vmem>>) attributes {dimension_semantics = [#tpu.dimension_semantics<parallel>], iteration_bounds = array<i64: 4>, scalar_prefetch = 0 : i64, scratch_operands = 0 : i64, tpu.core_type = #tpu.core_type<tc>, window_params = [{transform_indices = @transform_0, window_bounds = array<i64: 1, 8, 32>}, {transform_indices = @transform_1, window_bounds = array<i64: 1, 8, 2>}, {pipeline_mode = #tpu.pipeline_mode<synchronous>, transform_indices = @transform_2, window_bounds = array<i64: 32, 64>}, {pipeline_mode = #tpu.pipeline_mode<synchronous>, transform_indices = @transform_3, window_bounds = array<i64: 1, 64>}, {pipeline_mode = #tpu.pipeline_mode<synchronous>, transform_indices = @transform_4, window_bounds = array<i64: 1, 64>}, {transform_indices = @transform_5, window_bounds = array<i64: 3, 2>}, {transform_indices = @transform_6, window_bounds = array<i64: 1, 8, 6>}]} {
    %c0 = arith.constant 0 : index
    %c0_0 = arith.constant 0 : index
    %c0_1 = arith.constant 0 : index
    %0 = vector.load %arg1[%c0, %c0_0, %c0_1] : memref<1x8x32xf32, #tpu.memory_space<vmem>>, vector<1x8x32xf32>
    %1 = vector.shape_cast %0 : vector<1x8x32xf32> to vector<8x32xf32>
    %c0_2 = arith.constant 0 : index
    %c0_3 = arith.constant 0 : index
    %2 = vector.load %arg3[%c0_2, %c0_3] : memref<32x64xf32, #tpu.memory_space<vmem>>, vector<32x64xf32>
    %cst = arith.constant dense<0.000000e+00> : vector<8x64xf32>
    %3 = tpu.matmul %1, %2, %cst {dimension_numbers = #tpu.dot_dimension_numbers<[1], [0], [0], [1], [0, 0, 1, 1], [], []>} : vector<8x32xf32>, vector<32x64xf32>, vector<8x64xf32> -> vector<8x64xf32>
    %c0_4 = arith.constant 0 : index
    %c0_5 = arith.constant 0 : index
    %4 = vector.load %arg4[%c0_4, %c0_5] : memref<1x64xf32, #tpu.memory_space<vmem>>, vector<1x64xf32>
    %5 = vector.broadcast %4 : vector<1x64xf32> to vector<8x64xf32>
    %6 = arith.addf %3, %5 : vector<8x64xf32>
    %7 = math.tanh %6 : vector<8x64xf32>
    %c0_6 = arith.constant 0 : index
    %c0_7 = arith.constant 0 : index
    %8 = vector.load %arg5[%c0_6, %c0_7] : memref<1x64xf32, #tpu.memory_space<vmem>>, vector<1x64xf32>
    %9 = vector.broadcast %8 : vector<1x64xf32> to vector<8x64xf32>
    %10 = arith.mulf %7, %9 : vector<8x64xf32>
    %11 = tpu.iota {dimensions = array<i32: 1>} : vector<8x64xi32>
    %cst_8 = arith.constant 0.000000e+00 : f32
    %12 = vector.broadcast %cst_8 : f32 to vector<8x64xf32>
    %c32_i32 = arith.constant 32 : i32
    %13 = vector.broadcast %c32_i32 : i32 to vector<8x64xi32>
    %14 = arith.cmpi slt, %11, %13 : vector<8x64xi32>
    %15 = arith.select %14, %10, %12 : vector<8x64xi1>, vector<8x64xf32>
    %cst_9 = arith.constant dense<0.000000e+00> : vector<8xf32>
    %16 = vector.multi_reduction <add>, %15, %cst_9 [1] : vector<8x64xf32> to vector<8xf32>
    %17 = vector.shape_cast %16 : vector<8xf32> to vector<8x1xf32>
    %c32_i32_10 = arith.constant 32 : i32
    %18 = vector.broadcast %c32_i32_10 : i32 to vector<8x64xi32>
    %19 = arith.cmpi sge, %11, %18 : vector<8x64xi32>
    %20 = arith.select %19, %10, %12 : vector<8x64xi1>, vector<8x64xf32>
    %cst_11 = arith.constant dense<0.000000e+00> : vector<8xf32>
    %21 = vector.multi_reduction <add>, %20, %cst_11 [1] : vector<8x64xf32> to vector<8xf32>
    %22 = vector.shape_cast %21 : vector<8xf32> to vector<8x1xf32>
    %c0_12 = arith.constant 0 : index
    %c0_13 = arith.constant 0 : index
    %23 = memref.load %arg6[%c0_12, %c0_13] : memref<3x2xf32, #tpu.memory_space<smem>>
    %24 = vector.broadcast %23 : f32 to vector<8x1xf32>
    %25 = arith.addf %17, %24 : vector<8x1xf32>
    %26 = arith.negf %25 : vector<8x1xf32>
    %27 = math.exp %26 : vector<8x1xf32>
    %cst_14 = arith.constant 1.000000e+00 : f32
    %28 = vector.broadcast %cst_14 : f32 to vector<8x1xf32>
    %29 = arith.addf %28, %27 : vector<8x1xf32>
    %30 = arith.divf %28, %29 : vector<8x1xf32>
    %c0_15 = arith.constant 0 : index
    %c1 = arith.constant 1 : index
    %31 = memref.load %arg6[%c0_15, %c1] : memref<3x2xf32, #tpu.memory_space<smem>>
    %32 = vector.broadcast %31 : f32 to vector<8x1xf32>
    %33 = arith.addf %22, %32 : vector<8x1xf32>
    %34 = arith.negf %33 : vector<8x1xf32>
    %35 = math.exp %34 : vector<8x1xf32>
    %cst_16 = arith.constant 1.000000e+00 : f32
    %36 = vector.broadcast %cst_16 : f32 to vector<8x1xf32>
    %37 = arith.addf %36, %35 : vector<8x1xf32>
    %38 = arith.divf %36, %37 : vector<8x1xf32>
    %cst_17 = arith.constant dense<0.000000e+00> : vector<1xf32>
    %39 = vector.multi_reduction <add>, %30, %cst_17 [0] : vector<8x1xf32> to vector<1xf32>
    %40 = vector.shape_cast %39 : vector<1xf32> to vector<1x1xf32>
    %41 = tpu.reciprocal %40 : vector<1x1xf32> -> vector<1x1xf32>
    %42 = vector.broadcast %41 : vector<1x1xf32> to vector<8x1xf32>
    %43 = arith.mulf %30, %42 : vector<8x1xf32>
    %cst_18 = arith.constant dense<0.000000e+00> : vector<1xf32>
    %44 = vector.multi_reduction <add>, %38, %cst_18 [0] : vector<8x1xf32> to vector<1xf32>
    %45 = vector.shape_cast %44 : vector<1xf32> to vector<1x1xf32>
    %46 = tpu.reciprocal %45 : vector<1x1xf32> -> vector<1x1xf32>
    %47 = vector.broadcast %46 : vector<1x1xf32> to vector<8x1xf32>
    %48 = arith.mulf %38, %47 : vector<8x1xf32>
    %c0_19 = arith.constant 0 : index
    %c0_20 = arith.constant 0 : index
    %c0_21 = arith.constant 0 : index
    %49 = vector.load %arg2[%c0_19, %c0_20, %c0_21] : memref<1x8x2xf32, #tpu.memory_space<vmem>>, vector<1x8x2xf32>
    %50 = vector.shape_cast %49 : vector<1x8x2xf32> to vector<8x2xf32>
    %51 = vector.extract_strided_slice %50 {offsets = [0, 0], sizes = [8, 1], strides = [1, 1]} : vector<8x2xf32> to vector<8x1xf32>
    %52 = arith.mulf %51, %43 : vector<8x1xf32>
    %cst_22 = arith.constant dense<0.000000e+00> : vector<1xf32>
    %53 = vector.multi_reduction <add>, %52, %cst_22 [0] : vector<8x1xf32> to vector<1xf32>
    %54 = vector.shape_cast %53 : vector<1xf32> to vector<1x1xf32>
    %55 = vector.extract_strided_slice %50 {offsets = [0, 1], sizes = [8, 1], strides = [1, 1]} : vector<8x2xf32> to vector<8x1xf32>
    %56 = arith.mulf %55, %48 : vector<8x1xf32>
    %cst_23 = arith.constant dense<0.000000e+00> : vector<1xf32>
    %57 = vector.multi_reduction <add>, %56, %cst_23 [0] : vector<8x1xf32> to vector<1xf32>
    %58 = vector.shape_cast %57 : vector<1xf32> to vector<1x1xf32>
    %c1_24 = arith.constant 1 : index
    %c0_25 = arith.constant 0 : index
    %59 = memref.load %arg6[%c1_24, %c0_25] : memref<3x2xf32, #tpu.memory_space<smem>>
    %60 = vector.broadcast %59 : f32 to vector<1x1xf32>
    %61 = arith.mulf %54, %60 : vector<1x1xf32>
    %c2 = arith.constant 2 : index
    %c0_26 = arith.constant 0 : index
    %62 = memref.load %arg6[%c2, %c0_26] : memref<3x2xf32, #tpu.memory_space<smem>>
    %63 = vector.broadcast %62 : f32 to vector<1x1xf32>
    %64 = arith.addf %61, %63 : vector<1x1xf32>
    %65 = arith.negf %64 : vector<1x1xf32>
    %66 = math.exp %65 : vector<1x1xf32>
    %cst_27 = arith.constant 1.000000e+00 : f32
    %67 = vector.broadcast %cst_27 : f32 to vector<1x1xf32>
    %68 = arith.addf %67, %66 : vector<1x1xf32>
    %69 = arith.divf %67, %68 : vector<1x1xf32>
    %c1_28 = arith.constant 1 : index
    %c1_29 = arith.constant 1 : index
    %70 = memref.load %arg6[%c1_28, %c1_29] : memref<3x2xf32, #tpu.memory_space<smem>>
    %71 = vector.broadcast %70 : f32 to vector<1x1xf32>
    %72 = arith.mulf %58, %71 : vector<1x1xf32>
    %c2_30 = arith.constant 2 : index
    %c1_31 = arith.constant 1 : index
    %73 = memref.load %arg6[%c2_30, %c1_31] : memref<3x2xf32, #tpu.memory_space<smem>>
    %74 = vector.broadcast %73 : f32 to vector<1x1xf32>
    %75 = arith.addf %72, %74 : vector<1x1xf32>
    %76 = arith.negf %75 : vector<1x1xf32>
    %77 = math.exp %76 : vector<1x1xf32>
    %cst_32 = arith.constant 1.000000e+00 : f32
    %78 = vector.broadcast %cst_32 : f32 to vector<1x1xf32>
    %79 = arith.addf %78, %77 : vector<1x1xf32>
    %80 = arith.divf %78, %79 : vector<1x1xf32>
    %c0_33 = arith.constant 0 : index
    %c0_34 = arith.constant 0 : index
    %c0_35 = arith.constant 0 : index
    %81 = vector.load %arg7[%c0_33, %c0_34, %c0_35] : memref<1x8x6xf32, #tpu.memory_space<vmem>>, vector<1x8x1xf32>
    %82 = vector.shape_cast %81 : vector<1x8x1xf32> to vector<8x1xf32>
    %83 = vector.shape_cast %43 : vector<8x1xf32> to vector<1x8x1xf32>
    tpu.vector_store %arg7[%c0_33, %c0_34, %c0_35], %83 {strides = array<i32>} : memref<1x8x6xf32, #tpu.memory_space<vmem>>, vector<1x8x1xf32>,
    %c0_36 = arith.constant 0 : index
    %c0_37 = arith.constant 0 : index
    %c1_38 = arith.constant 1 : index
    %84 = vector.load %arg7[%c0_36, %c0_37, %c1_38] : memref<1x8x6xf32, #tpu.memory_space<vmem>>, vector<1x8x1xf32>
    %85 = vector.shape_cast %84 : vector<1x8x1xf32> to vector<8x1xf32>
    %86 = vector.shape_cast %48 : vector<8x1xf32> to vector<1x8x1xf32>
    tpu.vector_store %arg7[%c0_36, %c0_37, %c1_38], %86 {strides = array<i32>} : memref<1x8x6xf32, #tpu.memory_space<vmem>>, vector<1x8x1xf32>,
    %c0_39 = arith.constant 0 : index
    %c0_40 = arith.constant 0 : index
    %c2_41 = arith.constant 2 : index
    %87 = vector.load %arg7[%c0_39, %c0_40, %c2_41] : memref<1x8x6xf32, #tpu.memory_space<vmem>>, vector<1x8x1xf32>
    %88 = vector.shape_cast %87 : vector<1x8x1xf32> to vector<8x1xf32>
    %89 = vector.shape_cast %30 : vector<8x1xf32> to vector<1x8x1xf32>
    tpu.vector_store %arg7[%c0_39, %c0_40, %c2_41], %89 {strides = array<i32>} : memref<1x8x6xf32, #tpu.memory_space<vmem>>, vector<1x8x1xf32>,
    %c0_42 = arith.constant 0 : index
    %c0_43 = arith.constant 0 : index
    %c3 = arith.constant 3 : index
    %90 = vector.load %arg7[%c0_42, %c0_43, %c3] : memref<1x8x6xf32, #tpu.memory_space<vmem>>, vector<1x8x1xf32>
    %91 = vector.shape_cast %90 : vector<1x8x1xf32> to vector<8x1xf32>
    %92 = vector.shape_cast %38 : vector<8x1xf32> to vector<1x8x1xf32>
    tpu.vector_store %arg7[%c0_42, %c0_43, %c3], %92 {strides = array<i32>} : memref<1x8x6xf32, #tpu.memory_space<vmem>>, vector<1x8x1xf32>,
    %93 = vector.shape_cast %69 : vector<1x1xf32> to vector<1x1xf32>
    %94 = vector.broadcast %93 : vector<1x1xf32> to vector<8x1xf32>
    %c0_44 = arith.constant 0 : index
    %c0_45 = arith.constant 0 : index
    %c4 = arith.constant 4 : index
    %95 = vector.load %arg7[%c0_44, %c0_45, %c4] : memref<1x8x6xf32, #tpu.memory_space<vmem>>, vector<1x8x1xf32>
    %96 = vector.shape_cast %95 : vector<1x8x1xf32> to vector<8x1xf32>
    %97 = vector.shape_cast %94 : vector<8x1xf32> to vector<1x8x1xf32>
    tpu.vector_store %arg7[%c0_44, %c0_45, %c4], %97 {strides = array<i32>} : memref<1x8x6xf32, #tpu.memory_space<vmem>>, vector<1x8x1xf32>,
    %98 = vector.shape_cast %80 : vector<1x1xf32> to vector<1x1xf32>
    %99 = vector.broadcast %98 : vector<1x1xf32> to vector<8x1xf32>
    %c0_46 = arith.constant 0 : index
    %c0_47 = arith.constant 0 : index
    %c5 = arith.constant 5 : index
    %100 = vector.load %arg7[%c0_46, %c0_47, %c5] : memref<1x8x6xf32, #tpu.memory_space<vmem>>, vector<1x8x1xf32>
    %101 = vector.shape_cast %100 : vector<1x8x1xf32> to vector<8x1xf32>
    %102 = vector.shape_cast %99 : vector<8x1xf32> to vector<1x8x1xf32>
    tpu.vector_store %arg7[%c0_46, %c0_47, %c5], %102 {strides = array<i32>} : memref<1x8x6xf32, #tpu.memory_space<vmem>>, vector<1x8x1xf32>,
    return
  }
  func.func @transform_0(%arg0: i32) -> (i32, i32, i32) {
    %c0_i32 = arith.constant 0 : i32
    %c0_i32_0 = arith.constant 0 : i32
    %c0_i32_1 = arith.constant 0 : i32
    return %arg0, %c0_i32, %c0_i32_0 : i32, i32, i32
  }
  func.func @transform_1(%arg0: i32) -> (i32, i32, i32) {
    %c0_i32 = arith.constant 0 : i32
    %c0_i32_0 = arith.constant 0 : i32
    %c0_i32_1 = arith.constant 0 : i32
    return %arg0, %c0_i32, %c0_i32_0 : i32, i32, i32
  }
  func.func @transform_2(%arg0: i32) -> (i32, i32) {
    %c0_i32 = arith.constant 0 : i32
    %c0_i32_0 = arith.constant 0 : i32
    %c0_i32_1 = arith.constant 0 : i32
    return %c0_i32, %c0_i32_0 : i32, i32
  }
  func.func @transform_3(%arg0: i32) -> (i32, i32) {
    %c0_i32 = arith.constant 0 : i32
    %c0_i32_0 = arith.constant 0 : i32
    %c0_i32_1 = arith.constant 0 : i32
    return %c0_i32, %c0_i32_0 : i32, i32
  }
  func.func @transform_4(%arg0: i32) -> (i32, i32) {
    %c0_i32 = arith.constant 0 : i32
    %c0_i32_0 = arith.constant 0 : i32
    %c0_i32_1 = arith.constant 0 : i32
    return %c0_i32, %c0_i32_0 : i32, i32
  }
  func.func @transform_5(%arg0: i32) -> (i32, i32) {
    %c0_i32 = arith.constant 0 : i32
    %c0_i32_0 = arith.constant 0 : i32
    %c0_i32_1 = arith.constant 0 : i32
    return %c0_i32, %c0_i32_0 : i32, i32
  }
  func.func @transform_6(%arg0: i32) -> (i32, i32, i32) {
    %c0_i32 = arith.constant 0 : i32
    %c0_i32_0 = arith.constant 0 : i32
    %c0_i32_1 = arith.constant 0 : i32
    return %arg0, %c0_i32, %c0_i32_0 : i32, i32, i32
  }
}

</mosaic_0001>

<bundles_post_ra>
// kernel: fused_attention_classifiers.1
= control target key start
LH: loop header
LB: loop body
LE: loop exit
PB: predicated region body
PF: predicated region fallthrough
CT: control target
= control target key end

     0   :  { %11 = vsyncpa [#allocation3], 0  ;;  %s854_s0 = inlined_call_operand.vmem [shape: f32[4,8,32], index: 0, kind: input, shape index: {}]   ;;  %s855_s1 = inlined_call_operand.vmem [shape: f32[4,8,2], index: 1, kind: input, shape index: {}]   ;;  %s856_s2 = inlined_call_operand.hbm [shape: f32[32,64], index: 2, kind: input, shape index: {}]   ;;  %s857_s3 = inlined_call_operand.vmem [shape: f32[1,64], index: 3, kind: input, shape index: {}]   ;;  %s858_s4 = inlined_call_operand.vmem [shape: f32[1,64], index: 4, kind: input, shape index: {}]   ;;  %s859_s5 = inlined_call_operand.vmem [shape: f32[3,2], index: 5, kind: input, shape index: {}]   ;;  %s860_s6 = inlined_call_operand.vmem [shape: f32[4,8,6], index: 6, kind: output, shape index: {}]  }
   0x1   :  { %12 = vsyncpa [#allocation4], 0  ;;  %s790_s21 = smov 0  }
   0x2 LB: > { %s196_s24 = sshll.u32 %s856_s2, 4  ;;  %s609_s25 = sadd.s32 4294967295, %s748_s21   ;;  %s748_s21 = sphi %s790_s21, %s18_s21   ;;  %s197_s24 = int_to_ptr.hbm [resolvable:$true] %s196_s24 }
   0x3   : > { %p611_p0 = scmp.ge.s32.totalorder %s748_s21, 1  ;;  %p185_p1 = scmp.lt.s32.totalorder %s748_s21, 5 }
   0x4   : > { %p648_p2 = scmp.eq.s32.totalorder %s609_s25, 0  ;;  %s750_s27 = smov [#allocation2]  }
   0x5   : > { %p801_p3 = pnand %p611_p0, %p185_p1  ;;  %s198_s28 = sshll.u32 %s750_s27, 4  ;;  %s199_s28 = int_to_ptr.vmem [resolvable:$true] %s198_s28 }
   0x6   : > { %s217_s7 = sshll.u32 %s859_s5, 4  ;;  %s751_s8 = smov 128   ;;  %s218_s7 = int_to_ptr.vmem [resolvable:$true] %s217_s7 }
   0x7   : > { %p641_p4 = pneg %p801_p3  ;;  %s752_s9 = smov 8  }
   0x8   : > { %s753_s10 = smov [#allocation5]   ;;  %244 = sbr.rel (%p801_p3) target bundleno = 515 (0x203), region = 44 }
   0x9   : > { %p642_p5 = pnand %p648_p2, %p641_p4 }
   0xb   : > { %644 = dma.hbm_to_vmem [thread:$0]  (!%p642_p5), %s197_s24, 512, %s199_s28, [#allocation3], %s751_s8, %s751_s8, %s752_s9  }
   0xc   : > { %647 = dma.vmem_to_smem (!%p642_p5), %s218_s7, 64, %s753_s10, [#allocation4]  }
   0xd   : > { %739 = dma.done.wait (%p648_p2), [#allocation3], 512  }
   0xe   : > { %741 = vsyncadd (%p648_p2), [#allocation3], 4294966784 }
   0xf   : > { %743 = dma.done.wait (%p648_p2), [#allocation4], 64  }
  0x10   : > { %745 = vsyncadd (%p648_p2), [#allocation4], 4294967232 }
  0x11   : > { %256 = sfence }
  0x12   : > { %v299_v0 = vld [vmem:[#allocation2 + $0x18] sm:$0xff]  ;;  %v298_v1 = vld [vmem:[#allocation2 + $0x10] sm:$0xff]  ;;  %p283_p6 = scmp.lt.s32.totalorder %s609_s25, 3  ;;  %v297_v2 = vld [vmem:[#allocation2 + $0x8] sm:$0xff]  ;;  %vm304_vm0 = vcmask 261120   ;;  %v334_v8 = vlaneseq  ;;  %vm338_vm2 = vcmask 523264  }
  0x13   : > { %320 = vmatpush.msra.mxu0 %v299_v0  ;;  %v296_v3 = vld [vmem:[#allocation2] sm:$0xff]  ;;  %s347_s19 = sld [smem:[#allocation5]]  ;;  %s754_s8 = smov 4  }
  0x14   : > { %s863_s25 = smov (!%p283_p6, %s609_s25), 3  ;;  %v665_v5 = vld [vmem:[%s857_s3] ss:$0 sm:$0xff]  ;;  %v335_v9 = vand.u32 127, %v334_v8  ;;  %s623_s20 = sld [smem:[#allocation5 + $0x1]] }
  0x15   : > { %321 = vmatpush.msra.mxu0 %v298_v1  ;;  %s817_s11 = sshll.u32 %s863_s25, 3  ;;  %v666_v10 = vld [vmem:[%s858_s4] ss:$0 sm:$0xff]  ;;  %s625_s28 = sld [smem:[#allocation5 + $0x80]] }
  0x16   : > { %s286_s14 = scalar_lea.vmem %s854_s0, %s817_s11  ;;  %vm336_vm1 = vcmp.lt.s32.totalorder %v335_v9, 32  ;;  %vm342_vm3 = vcmp.ge.s32.totalorder %v335_v9, 32  ;;  %s290_s24 = scalar_lea.vmem %s855_s1, %s817_s11 }
  0x17   : > { %322 = vmatpush.msra.mxu0 %v297_v2  ;;  %v295_v4 = vld [vmem:[%s286_s14] sm:$0xff]  ;;  %s841_s27 = scalar_lea.vmem %s860_s6, %s817_s11  ;;  %s626_s29 = sld [smem:[#allocation5 + $0x100]] }
  0x18   : > { %s628_s30 = sld [smem:[#allocation5 + $0x81]] }
  0x19   : > { %323 = vmatpush.msra.mxu0 %v296_v3  ;;  %v348_v17 = vstv %s347_s19  ;;  %s629_s7 = sld [smem:[#allocation5 + $0x101]] }
  0x1a   : > { %621 = vmatmul.msk.f32.vlgmr.msra.gmra.mxu0 %vm304_vm0, %v295_v4  ;;  %v370_v21 = vstv %s623_s20  ;;  %vm435_vm0 = vcmask 7168  }
  0x97   : > { %v325_v6 = vpop.f32.mrf.mxu0 }
  0x98   : > { %v326_v7 = vadd.f32 %v665_v5, %v325_v6 }
  0x9a   : > { %667 = vtanh.f32 %v326_v7  ;;  %v433_v7 = vld [vmem:[%s290_s24] sm:$0xff] }
  0xa0   : > { %v668_v11 = vpop.eup %667 }
  0xa1   : > { %v333_v12 = vmul.f32 %v668_v11, %v666_v10 }
  0xa3   : > { %v337_v13 = vsel %vm336_vm1, %v333_v12, 0.0  ;;  %v343_v15 = vsel %vm342_vm3, %v333_v12, 0.0 }
  0xa4   : > { %v339_v14 = vsel %vm338_vm2, %v337_v13, 0.0  ;;  %v344_v16 = vsel %vm338_vm2, %v343_v15, 0.0 }
  0xa5   : > { %340 = vadd.xlane.f32.xlu0 %v339_v14 }
  0xad   : > { %345 = vadd.xlane.f32.xlu0 %v344_v16 }
 0x118   : > { %v341_v18 = vpop.xlane.xlu0 %340 }
 0x119   : > { %v349_v19 = vadd.f32 %v348_v17, %v341_v18 }
 0x11b   : > { %v622_v20 = vmul.f32 -1.442695, %v349_v19 }
 0x11d   : > { %669 = vpow2.f32 %v622_v20 }
 0x120   : > { %v346_v22 = vpop.xlane.xlu0 %345 }
 0x121   : > { %v371_v23 = vadd.f32 %v370_v21, %v346_v22 }
 0x123   : > { %v670_v24 = vpop.eup %669  ;;  %v624_v25 = vmul.f32 -1.442695, %v371_v23 }
 0x124   : > { %v353_v26 = vadd.f32 1.0, %v670_v24 }
 0x125   : > { %671 = vpow2.f32 %v624_v25 }
 0x126   : > { %673 = vrcp.f32 %v353_v26  ;;  %v365_v32 = vand.u32 2147483648, %v353_v26  ;;  %v363_v34 = vand.u32 2147483647, %v353_v26  ;;  %vm359_vm5 = vweird.f32 %v353_v26 }
 0x128   : > { %v366_v37 = vor.u32 1.1754944e-38, %v365_v32  ;;  %vm364_vm7 = vcmp.eq.f32.partialorder %v363_v34, 8.507059e+37 }
 0x12b   : > { %v672_v27 = vpop.eup %671 }
 0x12c   : > { %v674_v28 = vpop.eup %673  ;;  %v375_v29 = vadd.f32 1.0, %v672_v27 }
 0x12d   : > { %v355_v30 = vmul.f32 %v674_v28, %v353_v26  ;;  %vm360_vm4 = vweird.f32 %v674_v28 }
 0x12e   : > { %675 = vrcp.f32 %v375_v29  ;;  %vm361_vm6 = vmor %vm359_vm5, %vm360_vm4  ;;  %v387_v43 = vand.u32 2147483648, %v375_v29  ;;  %v385_v46 = vand.u32 2147483647, %v375_v29  ;;  %vm381_vm9 = vweird.f32 %v375_v29 }
 0x12f   : > { %v356_v31 = vsub.f32 1.0, %v355_v30  ;;  %vm444_vm5 = vcmask 15368   ;;  %v453_v30 = vstv %s625_s28 }
 0x130   : > { %v388_v49 = vor.u32 1.1754944e-38, %v387_v43  ;;  %vm386_vm11 = vcmp.eq.f32.partialorder %v385_v46, 8.507059e+37 }
 0x131   : > { %v357_v33 = vmul.f32 %v674_v28, %v356_v31 }
 0x133   : > { %v358_v35 = vadd.f32 %v674_v28, %v357_v33  ;;  %v456_v33 = vstv %s626_s29 }
 0x134   : > { %v676_v36 = vpop.eup %675 }
 0x135   : > { %v362_v38 = vsel %vm361_vm6, %v674_v28, %v358_v35  ;;  %v377_v39 = vmul.f32 %v676_v36, %v375_v29  ;;  %vm382_vm8 = vweird.f32 %v676_v36  ;;  %vm504_vm6 = vcmask 23568  }
 0x136   : > { %v829_v40 = vsel %vm364_vm7, %v366_v37, %v362_v38  ;;  %vm383_vm10 = vmor %vm381_vm9, %vm382_vm8  ;;  %vm506_vm7 = vcmask 31768  }
 0x137   : > { %v391_v41 = vrot.slane %v829_v40, 4  ;;  %v378_v42 = vsub.f32 1.0, %v377_v39 }
 0x139   : > { %v392_v44 = vadd.f32 %v391_v41, %v829_v40  ;;  %v379_v45 = vmul.f32 %v676_v36, %v378_v42  ;;  %v478_v41 = vstv %s628_s30 }
 0x13b   : > { %v393_v47 = vrot.slane %v392_v44, 2  ;;  %v380_v48 = vadd.f32 %v676_v36, %v379_v45 }
 0x13d   : > { %v394_v50 = vadd.f32 %v393_v47, %v392_v44  ;;  %v384_v51 = vsel %vm383_vm10, %v676_v36, %v380_v48 }
 0x13e   : > { %v389_v52 = vsel %vm386_vm11, %v388_v49, %v384_v51 }
 0x13f   : > { %v395_v53 = vrot.slane %v394_v50, 1  ;;  %v412_v54 = vrot.slane %v389_v52, 4 }
 0x141   : > { %v396_v55 = vadd.f32 %v395_v53, %v394_v50  ;;  %v413_v56 = vadd.f32 %v412_v54, %v389_v52 }
 0x143   : > { %677 = vrcp.f32 %v396_v55  ;;  %v414_v57 = vrot.slane %v413_v56, 2  ;;  %v408_v0 = vand.u32 2147483648, %v396_v55  ;;  %v406_v2 = vand.u32 2147483647, %v396_v55 }
 0x144   : > { %vm402_vm13 = vweird.f32 %v396_v55 }
 0x145   : > { %v415_v58 = vadd.f32 %v414_v57, %v413_v56  ;;  %v409_v4 = vor.u32 1.1754944e-38, %v408_v0  ;;  %vm407_vm15 = vcmp.eq.f32.partialorder %v406_v2, 8.507059e+37 }
 0x147   : > { %v416_v59 = vrot.slane %v415_v58, 1 }
 0x149   : > { %v678_v60 = vpop.eup %677  ;;  %v417_v62 = vadd.f32 %v416_v59, %v415_v58 }
 0x14a   : > { %v398_v61 = vmul.f32 %v678_v60, %v396_v55  ;;  %vm403_vm12 = vweird.f32 %v678_v60 }
 0x14b   : > { %679 = vrcp.f32 %v417_v62  ;;  %vm404_vm14 = vmor %vm402_vm13, %vm403_vm12  ;;  %v429_v13 = vand.u32 2147483648, %v417_v62  ;;  %v427_v15 = vand.u32 2147483647, %v417_v62  ;;  %vm423_vm2 = vweird.f32 %v417_v62 }
 0x14c   : > { %v399_v63 = vsub.f32 1.0, %v398_v61 }
 0x14d   : > { %v430_v19 = vor.u32 1.1754944e-38, %v429_v13  ;;  %vm428_vm4 = vcmp.eq.f32.partialorder %v427_v15, 8.507059e+37 }
 0x14e   : > { %v400_v1 = vmul.f32 %v678_v60, %v399_v63 }
 0x150   : > { %v401_v3 = vadd.f32 %v678_v60, %v400_v1 }
 0x151   : > { %v680_v5 = vpop.eup %679 }
 0x152   : > { %v405_v6 = vsel %vm404_vm14, %v678_v60, %v401_v3  ;;  %v419_v9 = vmul.f32 %v680_v5, %v417_v62  ;;  %vm424_vm1 = vweird.f32 %v680_v5 }
 0x153   : > { %v410_v8 = vsel %vm407_vm15, %v409_v4, %v405_v6  ;;  %vm425_vm3 = vmor %vm423_vm2, %vm424_vm1  ;;  %vm518_vm1 = vcmask 48168  }
 0x154   : > { %v411_v10 = vmul.f32 %v410_v8, %v829_v40  ;;  %v420_v11 = vsub.f32 1.0, %v419_v9 }
 0x156   : > { %v434_v12 = vmul.f32 %v433_v7, %v411_v10  ;;  %502 = vst.msk [vmem:[%s841_s27] sm:$0xff] %vm435_vm0, %v411_v10  ;;  %v421_v14 = vmul.f32 %v680_v5, %v420_v11 }
 0x158   : > { %v436_v16 = vsel %vm435_vm0, %v434_v12, 0.0  ;;  %v422_v18 = vadd.f32 %v680_v5, %v421_v14  ;;  %vm512_vm0 = vcmask 39968  }
 0x159   : > { %v437_v17 = vrot.slane %v436_v16, 4 }
 0x15a   : > { %v426_v20 = vsel %vm425_vm3, %v680_v5, %v422_v18 }
 0x15b   : > { %v438_v21 = vadd.f32 %v437_v17, %v436_v16  ;;  %v431_v22 = vsel %vm428_vm4, %v430_v19, %v426_v20 }
 0x15c   : > { %v432_v23 = vmul.f32 %v431_v22, %v389_v52 }
 0x15d   : > { %v439_v24 = vrot.slane %v438_v21, 2 }
 0x15e   : > { %v443_v25 = vmul.f32 %v433_v7, %v432_v23  ;;  %503 = vst.msk [vmem:[%s841_s27] sm:$0xff] %vm444_vm5, %v432_v23 }
 0x15f   : > { %v440_v26 = vadd.f32 %v439_v24, %v438_v21  ;;  %505 = vst.msk [vmem:[%s841_s27] sm:$0xff] %vm504_vm6, %v829_v40  ;;  %v481_v40 = vstv %s629_s7 }
 0x160   : > { %v445_v27 = vsel %vm444_vm5, %v443_v25, 0.0  ;;  %507 = vst.msk [vmem:[%s841_s27] sm:$0xff] %vm506_vm7, %v389_v52 }
 0x161   : > { %v441_v28 = vrot.slane %v440_v26, 1  ;;  %v446_v29 = vrot.slane %v445_v27, 4 }
 0x163   : > { %v442_v31 = vadd.f32 %v441_v28, %v440_v26  ;;  %v447_v32 = vadd.f32 %v446_v29, %v445_v27 }
 0x165   : > { %v454_v34 = vmul.f32 %v453_v30, %v442_v31  ;;  %v448_v35 = vrot.slane %v447_v32, 2 }
 0x167   : > { %v457_v36 = vadd.f32 %v456_v33, %v454_v34  ;;  %v449_v37 = vadd.f32 %v448_v35, %v447_v32 }
 0x169   : > { %v627_v38 = vmul.f32 -1.442695, %v457_v36  ;;  %v450_v39 = vrot.slane %v449_v37, 1 }
 0x16b   : > { %681 = vpow2.f32 %v627_v38  ;;  %v451_v42 = vadd.f32 %v450_v39, %v449_v37 }
 0x16d   : > { %v479_v43 = vmul.f32 %v478_v41, %v451_v42 }
 0x16f   : > { %v482_v44 = vadd.f32 %v481_v40, %v479_v43 }
 0x171   : > { %v682_v45 = vpop.eup %681  ;;  %v630_v47 = vmul.f32 -1.442695, %v482_v44 }
 0x172   : > { %v461_v46 = vadd.f32 1.0, %v682_v45 }
 0x174   : > { %683 = vrcp.f32 %v461_v46  ;;  %v473_v53 = vand.u32 2147483648, %v461_v46  ;;  %v471_v55 = vand.u32 2147483647, %v461_v46  ;;  %vm467_vm9 = vweird.f32 %v461_v46 }
 0x175   : > { %685 = vpow2.f32 %v630_v47 }
 0x176   : > { %v474_v57 = vor.u32 1.1754944e-38, %v473_v53  ;;  %vm472_vm11 = vcmp.eq.f32.partialorder %v471_v55, 8.507059e+37 }
 0x17a   : > { %v684_v48 = vpop.eup %683 }
 0x17b   : > { %v686_v49 = vpop.eup %685  ;;  %v463_v50 = vmul.f32 %v684_v48, %v461_v46  ;;  %vm468_vm8 = vweird.f32 %v684_v48 }
 0x17c   : > { %v486_v51 = vadd.f32 1.0, %v686_v49  ;;  %vm469_vm10 = vmor %vm467_vm9, %vm468_vm8 }
 0x17d   : > { %v464_v52 = vsub.f32 1.0, %v463_v50 }
 0x17e   : > { %687 = vrcp.f32 %v486_v51  ;;  %v498_v63 = vand.u32 2147483648, %v486_v51  ;;  %v496_v1 = vand.u32 2147483647, %v486_v51  ;;  %vm492_vm13 = vweird.f32 %v486_v51 }
 0x17f   : > { %v465_v54 = vmul.f32 %v684_v48, %v464_v52 }
 0x180   : > { %v499_v3 = vor.u32 1.1754944e-38, %v498_v63  ;;  %vm497_vm15 = vcmp.eq.f32.partialorder %v496_v1, 8.507059e+37 }
 0x181   : > { %v466_v56 = vadd.f32 %v684_v48, %v465_v54 }
 0x183   : > { %v470_v58 = vsel %vm469_vm10, %v684_v48, %v466_v56 }
 0x184   : > { %v688_v59 = vpop.eup %687  ;;  %v475_v60 = vsel %vm472_vm11, %v474_v57, %v470_v58 }
 0x185   : > { %509 = vrot.lane.b32.xlu1 %v475_v60, %s754_s8  ;;  %v488_v61 = vmul.f32 %v688_v59, %v486_v51  ;;  %vm493_vm12 = vweird.f32 %v688_v59 }
 0x186   : > { %vm494_vm14 = vmor %vm492_vm13, %vm493_vm12 }
 0x187   : > { %v489_v62 = vsub.f32 1.0, %v488_v61 }
 0x189   : > { %v490_v0 = vmul.f32 %v688_v59, %v489_v62 }
 0x18b   : > { %v491_v2 = vadd.f32 %v688_v59, %v490_v0 }
 0x18d   : > { %v495_v4 = vsel %vm494_vm14, %v688_v59, %v491_v2 }
 0x18e   : > { %v500_v5 = vsel %vm497_vm15, %v499_v3, %v495_v4 }
 0x18f   : > { %515 = vrot.lane.b32.xlu1 %v500_v5, %s754_s8 }
 0x1f7   : > { %v510_v6 = vpop.permute.xlu1 %509 }
 0x1f8   : > { %513 = vst.msk [vmem:[%s841_s27] sm:$0xff] %vm512_vm0, %v510_v6 }
 0x201   : > { %v516_v7 = vpop.permute.xlu1 %515 }
 0x202   : > { %519 = vst.msk [vmem:[%s841_s27] sm:$0xff] %vm518_vm1, %v516_v7 }
 0x203 PF: > { %s18_s21 = sadd.s32 1, %s748_s21  }
 0x204   : > { %p15_p7 = scmp.ge.s32.totalorder %s18_s21, 6  }
 0x206   :  { %17 = sbr.rel (!%p15_p7) target bundleno = 2 (0x2), region = 87 }
 0x20b   :  { %539 = vsyncpa [#allocation3], 1 }
 0x20c   :  { %541 = vsyncpa [#allocation3 + $0x1], 1 }
 0x20d   :  { %542 = vsyncpa [#allocation4], 1 }
 0x20e   :  { %544 = vsyncpa [#allocation4 + $0x1], 1 }

</bundles_post_ra>
